<compile_context>
chip_gen: v7x
topology: tpu7x:2x2x1
jax: 0.10.0
libtpu: 0.0.40
codegen_flags: <defaults>
</compile_context>

<pallas_src>
import math

import jax
import jax.numpy as jnp
from jax.experimental import pallas as pl
from jax.experimental.pallas import tpu as pltpu

N_HIDDEN_2 = 200
HIDDEN_CAT = 3 * N_HIDDEN_2          # 600
OUT_DIM = 2
C2 = [2, 7, 2, 2, 3]                 # sum = 16
C3 = [11, 3, 2, 10, 5]               # sum = 31
IN_CONT = 10
IN_TOTAL = IN_CONT + sum(C2) + sum(C3)   # 57
K_PAD = 64                               # padded K for the fused layer-1 matmul


def _vfl_head_kernel(x_ref, noise_ref, w1_ref, b1_ref, w2_ref, b2_ref, out_ref):
    # Fused layer 1: block-diagonal weight makes the three head matmuls one dot.
    h = (jnp.dot(x_ref[...], w1_ref[...], preferred_element_type=jnp.float32)
         + b1_ref[...] + noise_ref[...])
    # Layer 2 on the (implicitly concatenated) hidden vector.
    out = (jnp.dot(h, w2_ref[...], preferred_element_type=jnp.float32)
           + b2_ref[...])
    out_ref[...] = out.astype(out_ref.dtype)


def _full_spec(shape):
    # Single grid point; every array is one full block resident in VMEM.
    return pl.BlockSpec(shape, lambda i: tuple(0 for _ in shape))


def vfl_head_forward(xcat, noise, w1bd, b1cat, w2, b2):
    B = xcat.shape[0]
    args = (xcat, noise, w1bd, b1cat, w2, b2)
    return pl.pallas_call(
        _vfl_head_kernel,
        out_shape=jax.ShapeDtypeStruct((B, OUT_DIM), jnp.float32),
        grid=(1,),
        in_specs=[_full_spec(a.shape) for a in args],
        out_specs=_full_spec((B, OUT_DIM)),
        compiler_params=pltpu.CompilerParams(
            dimension_semantics=("arbitrary",)),
    )(*args)


def prepare_params(params):
    """Fold the per-head weights into one block-diagonal W1 and one bias row."""
    (w11, b11, w12, b12, w13, b13, w2, b2) = params
    w1bd = jnp.zeros((K_PAD, HIDDEN_CAT), jnp.float32)
    w1bd = w1bd.at[0:10, 0:N_HIDDEN_2].set(w11)
    w1bd = w1bd.at[10:26, N_HIDDEN_2:2 * N_HIDDEN_2].set(w12)
    w1bd = w1bd.at[26:57, 2 * N_HIDDEN_2:3 * N_HIDDEN_2].set(w13)
    b1cat = jnp.concatenate([b11, b12, b13]).reshape(1, HIDDEN_CAT)
    return w1bd, b1cat, w2, b2.reshape(1, OUT_DIM)


def onehot_concat(X, sizes):
    """PyTorch scatter_-based one-hot of (X - 1) per column, concatenated."""
    z = (X - 1.0).astype(jnp.int32)
    parts = [jax.nn.one_hot(z[:, i], sizes[i], dtype=jnp.float32)
             for i in range(len(sizes))]
    return jnp.concatenate(parts, axis=1)


def _linear_init(key, in_dim, out_dim):
    # Deterministic init mimicking nn.Linear's uniform(-1/sqrt(in), 1/sqrt(in)).
    kw, kb = jax.random.split(key)
    bound = 1.0 / math.sqrt(in_dim)
    w = jax.random.uniform(kw, (in_dim, out_dim), jnp.float32, -bound, bound)
    b = jax.random.uniform(kb, (out_dim,), jnp.float32, -bound, bound)
    return w, b


def forward(x, noise_scale, params, noise_key):
    """Full module forward: encoding + noise (glue) + Pallas kernel compute."""
    B = x.shape[0]
    X1 = x[:, :10]
    x2_oh = onehot_concat(x[:, 10:15], C2)   # [B, 16]
    x3_oh = onehot_concat(x[:, 15:], C3)     # [B, 31]

    # Single padded input [B, 64] (cols 57..63 are zero; matching W1bd rows are zero).
    xcat = jnp.zeros((B, K_PAD), jnp.float32)
    xcat = xcat.at[:, 0:10].set(X1)
    xcat = xcat.at[:, 10:26].set(x2_oh)
    xcat = xcat.at[:, 26:57].set(x3_oh)

    # Single [B, 600] Gaussian draw replaces three separate [B, 200] draws.
    # TODO(synk): could move this fully in-kernel via pltpu.prng_* + Box-Muller.
    std = math.sqrt(noise_scale)
    noise = std * jax.random.normal(noise_key, (B, HIDDEN_CAT), jnp.float32)

    w1bd, b1cat, w2, b2 = prepare_params(params)
    return vfl_head_forward(xcat, noise, w1bd, b1cat, w2, b2)


def _reference(x, noise_scale, params, noise_key):
    """Pure-JAX staged reference (layer-by-layer, matching module semantics)."""
    (w11, b11, w12, b12, w13, b13, w2, b2) = params
    X1 = x[:, :10]
    x2_oh = onehot_concat(x[:, 10:15], C2)
    x3_oh = onehot_concat(x[:, 15:], C3)
    B = x.shape[0]
    std = math.sqrt(noise_scale)
    noise = std * jax.random.normal(noise_key, (B, HIDDEN_CAT), jnp.float32)
    h1 = X1 @ w11 + b11 + noise[:, 0:N_HIDDEN_2]
    h2 = x2_oh @ w12 + b12 + noise[:, N_HIDDEN_2:2 * N_HIDDEN_2]
    h3 = x3_oh @ w13 + b13 + noise[:, 2 * N_HIDDEN_2:3 * N_HIDDEN_2]
    h = jnp.concatenate([h1, h2, h3], axis=1)
    return h @ w2 + b2


if __name__ == "__main__":
    key = jax.random.PRNGKey(0)
    k_params, k_data_cont, k_data_cat2, k_data_cat3, k_noise = jax.random.split(key, 5)

    # Parameters (deterministic, synthetic).
    kp = jax.random.split(k_params, 4)
    w11, b11 = _linear_init(kp[0], 10, N_HIDDEN_2)
    w12, b12 = _linear_init(kp[1], 16, N_HIDDEN_2)
    w13, b13 = _linear_init(kp[2], 31, N_HIDDEN_2)
    w2, b2 = _linear_init(kp[3], 3 * N_HIDDEN_2, OUT_DIM)
    params = (w11, b11, w12, b12, w13, b13, w2, b2)

    # Inputs: [B, 20] = 10 continuous + 5 categorical (1..C2[i]) + 5 categorical (1..C3[i]).
    B = 8
    x_cont = jax.random.normal(k_data_cont, (B, 10), jnp.float32)
    cat2_cols = [jax.random.randint(jax.random.fold_in(k_data_cat2, i), (B, 1), 1, C2[i] + 1)
                 for i in range(5)]
    cat3_cols = [jax.random.randint(jax.random.fold_in(k_data_cat3, i), (B, 1), 1, C3[i] + 1)
                 for i in range(5)]
    x_cat2 = jnp.concatenate(cat2_cols, axis=1).astype(jnp.float32)
    x_cat3 = jnp.concatenate(cat3_cols, axis=1).astype(jnp.float32)
    x = jnp.concatenate([x_cont, x_cat2, x_cat3], axis=1)

    noise_scale = 0.01

    out = forward(x, noise_scale, params, k_noise)
    out = jax.block_until_ready(out)

    ref = jax.block_until_ready(_reference(x, noise_scale, params, k_noise))
    assert out.shape == (B, OUT_DIM)
    assert jnp.allclose(out, ref, atol=1e-4, rtol=1e-4), "mismatch vs reference"

    print("KERNEL_OK")
</pallas_src>

<mosaic_0001>
module attributes {stable_mosaic.version = 11 : i64} {
  func.func @_vfl_head_kernel(%arg0: i32, %arg1: memref<8x64xf32, #tpu.memory_space<vmem>>, %arg2: memref<8x600xf32, #tpu.memory_space<vmem>>, %arg3: memref<64x600xf32, #tpu.memory_space<vmem>>, %arg4: memref<1x600xf32, #tpu.memory_space<vmem>>, %arg5: memref<600x2xf32, #tpu.memory_space<vmem>>, %arg6: memref<1x2xf32, #tpu.memory_space<vmem>>, %arg7: memref<8x2xf32, #tpu.memory_space<vmem>>) attributes {dimension_semantics = [#tpu.dimension_semantics<arbitrary>], iteration_bounds = array<i64: 1>, scalar_prefetch = 0 : i64, scratch_operands = 0 : i64, tpu.core_type = #tpu.core_type<tc>, window_params = [{pipeline_mode = #tpu.pipeline_mode<synchronous>, transform_indices = @transform_0, window_bounds = array<i64: 8, 64>}, {pipeline_mode = #tpu.pipeline_mode<synchronous>, transform_indices = @transform_1, window_bounds = array<i64: 8, 600>}, {pipeline_mode = #tpu.pipeline_mode<synchronous>, transform_indices = @transform_2, window_bounds = array<i64: 64, 600>}, {pipeline_mode = #tpu.pipeline_mode<synchronous>, transform_indices = @transform_3, window_bounds = array<i64: 1, 600>}, {pipeline_mode = #tpu.pipeline_mode<synchronous>, transform_indices = @transform_4, window_bounds = array<i64: 600, 2>}, {pipeline_mode = #tpu.pipeline_mode<synchronous>, transform_indices = @transform_5, window_bounds = array<i64: 1, 2>}, {pipeline_mode = #tpu.pipeline_mode<synchronous>, transform_indices = @transform_6, window_bounds = array<i64: 8, 2>}]} {
    %c0 = arith.constant 0 : index
    %c0_0 = arith.constant 0 : index
    %0 = vector.load %arg1[%c0, %c0_0] : memref<8x64xf32, #tpu.memory_space<vmem>>, vector<8x64xf32>
    %c0_1 = arith.constant 0 : index
    %c0_2 = arith.constant 0 : index
    %1 = vector.load %arg3[%c0_1, %c0_2] : memref<64x600xf32, #tpu.memory_space<vmem>>, vector<64x600xf32>
    %cst = arith.constant dense<0.000000e+00> : vector<8x600xf32>
    %2 = tpu.matmul %0, %1, %cst {dimension_numbers = #tpu.dot_dimension_numbers<[1], [0], [0], [1], [0, 0, 1, 1], [], []>} : vector<8x64xf32>, vector<64x600xf32>, vector<8x600xf32> -> vector<8x600xf32>
    %c0_3 = arith.constant 0 : index
    %c0_4 = arith.constant 0 : index
    %3 = vector.load %arg4[%c0_3, %c0_4] : memref<1x600xf32, #tpu.memory_space<vmem>>, vector<1x600xf32>
    %4 = vector.broadcast %3 : vector<1x600xf32> to vector<8x600xf32>
    %5 = arith.addf %2, %4 : vector<8x600xf32>
    %c0_5 = arith.constant 0 : index
    %c0_6 = arith.constant 0 : index
    %6 = vector.load %arg2[%c0_5, %c0_6] : memref<8x600xf32, #tpu.memory_space<vmem>>, vector<8x600xf32>
    %7 = arith.addf %5, %6 : vector<8x600xf32>
    %c0_7 = arith.constant 0 : index
    %c0_8 = arith.constant 0 : index
    %8 = vector.load %arg5[%c0_7, %c0_8] : memref<600x2xf32, #tpu.memory_space<vmem>>, vector<600x2xf32>
    %cst_9 = arith.constant dense<0.000000e+00> : vector<8x2xf32>
    %9 = tpu.matmul %7, %8, %cst_9 {dimension_numbers = #tpu.dot_dimension_numbers<[1], [0], [0], [1], [0, 0, 1, 1], [], []>} : vector<8x600xf32>, vector<600x2xf32>, vector<8x2xf32> -> vector<8x2xf32>
    %c0_10 = arith.constant 0 : index
    %c0_11 = arith.constant 0 : index
    %10 = vector.load %arg6[%c0_10, %c0_11] : memref<1x2xf32, #tpu.memory_space<vmem>>, vector<1x2xf32>
    %11 = vector.broadcast %10 : vector<1x2xf32> to vector<8x2xf32>
    %12 = arith.addf %9, %11 : vector<8x2xf32>
    %c0_12 = arith.constant 0 : index
    %c0_13 = arith.constant 0 : index
    %13 = vector.load %arg7[%c0_12, %c0_13] : memref<8x2xf32, #tpu.memory_space<vmem>>, vector<8x2xf32>
    tpu.vector_store %arg7[%c0_12, %c0_13], %12 {strides = array<i32>} : memref<8x2xf32, #tpu.memory_space<vmem>>, vector<8x2xf32>,
    return
  }
  func.func @transform_0(%arg0: i32) -> (i32, i32) {
    %c0_i32 = arith.constant 0 : i32
    %c0_i32_0 = arith.constant 0 : i32
    %c0_i32_1 = arith.constant 0 : i32
    return %c0_i32, %c0_i32_0 : i32, i32
  }
  func.func @transform_1(%arg0: i32) -> (i32, i32) {
    %c0_i32 = arith.constant 0 : i32
    %c0_i32_0 = arith.constant 0 : i32
    %c0_i32_1 = arith.constant 0 : i32
    return %c0_i32, %c0_i32_0 : i32, i32
  }
  func.func @transform_2(%arg0: i32) -> (i32, i32) {
    %c0_i32 = arith.constant 0 : i32
    %c0_i32_0 = arith.constant 0 : i32
    %c0_i32_1 = arith.constant 0 : i32
    return %c0_i32, %c0_i32_0 : i32, i32
  }
  func.func @transform_3(%arg0: i32) -> (i32, i32) {
    %c0_i32 = arith.constant 0 : i32
    %c0_i32_0 = arith.constant 0 : i32
    %c0_i32_1 = arith.constant 0 : i32
    return %c0_i32, %c0_i32_0 : i32, i32
  }
  func.func @transform_4(%arg0: i32) -> (i32, i32) {
    %c0_i32 = arith.constant 0 : i32
    %c0_i32_0 = arith.constant 0 : i32
    %c0_i32_1 = arith.constant 0 : i32
    return %c0_i32, %c0_i32_0 : i32, i32
  }
  func.func @transform_5(%arg0: i32) -> (i32, i32) {
    %c0_i32 = arith.constant 0 : i32
    %c0_i32_0 = arith.constant 0 : i32
    %c0_i32_1 = arith.constant 0 : i32
    return %c0_i32, %c0_i32_0 : i32, i32
  }
  func.func @transform_6(%arg0: i32) -> (i32, i32) {
    %c0_i32 = arith.constant 0 : i32
    %c0_i32_0 = arith.constant 0 : i32
    %c0_i32_1 = arith.constant 0 : i32
    return %c0_i32, %c0_i32_0 : i32, i32
  }
}

</mosaic_0001>

<bundles_post_ra>
// kernel: tpu_custom_call.1
= control target key start
LH: loop header
LB: loop body
LE: loop exit
PB: predicated region body
PF: predicated region fallthrough
CT: control target
= control target key end

     0   :  { %v885_v3 = vmov 0.0   ;;  %vm91_vm0 = vcmask 523264   ;;  %v886_v60 = vmov 0.0|0.0   ;;  %vm887_vm1 = vmmov 0   ;;  %s1319_s2 = inlined_call_operand.vmem [shape: f32[64,600], index: 2, kind: input, shape index: {}]   ;;  %s1320_s4 = inlined_call_operand.vmem [shape: f32[600,2], index: 4, kind: input, shape index: {}]   ;;  %s1321_s0 = inlined_call_operand.vmem [shape: f32[8,64], index: 0, kind: input, shape index: {}]   ;;  %s1322_s3 = inlined_call_operand.vmem [shape: f32[1,600], index: 3, kind: input, shape index: {}]   ;;  %s1323_s1 = inlined_call_operand.vmem [shape: f32[8,600], index: 1, kind: input, shape index: {}]   ;;  %s1324_s5 = inlined_call_operand.vmem [shape: f32[1,2], index: 5, kind: input, shape index: {}]   ;;  %s1325_s6 = inlined_call_operand.vmem [shape: f32[8,2], index: 6, kind: output, shape index: {}]  }
   0x1   :  { %v25_v0 = vld [vmem:[%s1319_s2 + $0x8] sm:$0xff]  ;;  %v30_v1 = vld [vmem:[%s1319_s2 + $0x30] sm:$0xff]  ;;  %v24_v2 = vld [vmem:[%s1319_s2] sm:$0xff]  ;;  %159 = vmatprep.mubr.f32.mxu0 %v885_v3  ;;  %230 = vmatprep.mubr.f32.mxu1 %v885_v3  ;;  %vm399_vm2 = vcmask 719872   ;;  %vm613_vm3 = vcmask 15360  }
   0x2   :  { %v759_v4 = vpack.c.bf16 %v30_v1, %v25_v0  ;;  %v29_v5 = vld [vmem:[%s1319_s2 + $0x28] sm:$0xff]  ;;  %v27_v6 = vld [vmem:[%s1319_s2 + $0x18] sm:$0xff]  ;;  %v32_v7 = vld [vmem:[%s1319_s2 + $0x40] sm:$0xff] }
   0x3   :  { %v761_v8 = vpack.c.bf16 %v29_v5, %v24_v2  ;;  %v775_v9 = vpack.c.bf16 %v32_v7, %v27_v6  ;;  %v26_v10 = vld [vmem:[%s1319_s2 + $0x10] sm:$0xff]  ;;  %v31_v11 = vld [vmem:[%s1319_s2 + $0x38] sm:$0xff]  ;;  %v40_v14 = vld [vmem:[%s1319_s2 + $0x80] sm:$0xff] }
   0x4   :  { %v35_v12 = vld [vmem:[%s1319_s2 + $0x58] sm:$0xff]  ;;  %760 = vmatprep.subr.bf16.mxu0 %v759_v4  ;;  %v777_v13 = vpack.c.bf16 %v31_v11, %v26_v10  ;;  %v34_v15 = vld [vmem:[%s1319_s2 + $0x50] sm:$0xff]  ;;  %v37_v19 = vld [vmem:[%s1319_s2 + $0x68] sm:$0xff] }
   0x5   :  { %v39_v16 = vld [vmem:[%s1319_s2 + $0x78] sm:$0xff]  ;;  %762 = vmatpush1.bf16.msra.mxu0 %v761_v8  ;;  %776 = vmatprep.subr.bf16.mxu1 %v775_v9  ;;  %v763_v17 = vpack.c.bf16 %v40_v14, %v35_v12  ;;  %v42_v20 = vld [vmem:[%s1319_s2 + $0x90] sm:$0xff]  ;;  %v36_v21 = vld [vmem:[%s1319_s2 + $0x60] sm:$0xff] }
   0x6   :  { %v765_v18 = vpack.c.bf16 %v39_v16, %v34_v15  ;;  %778 = vmatpush1.bf16.msra.mxu1 %v777_v13  ;;  %v779_v22 = vpack.c.bf16 %v42_v20, %v37_v19  ;;  %v41_v23 = vld [vmem:[%s1319_s2 + $0x88] sm:$0xff]  ;;  %v50_v25 = vld [vmem:[%s1319_s2 + $0xd0] sm:$0xff]  ;;  %v44_v28 = vld [vmem:[%s1319_s2 + $0xa0] sm:$0xff] }
   0x7   :  { %v45_v24 = vld [vmem:[%s1319_s2 + $0xa8] sm:$0xff]  ;;  %764 = vmatprep.subr.bf16.mxu0 %v763_v17  ;;  %v781_v26 = vpack.c.bf16 %v41_v23, %v36_v21  ;;  %v47_v30 = vld [vmem:[%s1319_s2 + $0xb8] sm:$0xff]  ;;  %v52_v31 = vld [vmem:[%s1319_s2 + $0xe0] sm:$0xff] }
   0x8   :  { %v767_v27 = vpack.c.bf16 %v50_v25, %v45_v24  ;;  %v49_v29 = vld [vmem:[%s1319_s2 + $0xc8] sm:$0xff]  ;;  %780 = vmatprep.subr.bf16.mxu1 %v779_v22  ;;  %v46_v32 = vld [vmem:[%s1319_s2 + $0xb0] sm:$0xff]  ;;  %v51_v33 = vld [vmem:[%s1319_s2 + $0xd8] sm:$0xff]  ;;  %v783_v35 = vpack.c.bf16 %v52_v31, %v47_v30 }
   0x9   :  { %766 = vmatpush1.bf16.msra.mxu0 %v765_v18  ;;  %v769_v34 = vpack.c.bf16 %v49_v29, %v44_v28  ;;  %v55_v36 = vld [vmem:[%s1319_s2 + $0xf8] sm:$0xff]  ;;  %v60_v37 = vld [vmem:[%s1319_s2 + $0x120] sm:$0xff]  ;;  %v54_v38 = vld [vmem:[%s1319_s2 + $0xf0] sm:$0xff]  ;;  %v785_v39 = vpack.c.bf16 %v51_v33, %v46_v32 }
   0xa   :  { %782 = vmatpush1.bf16.msra.mxu1 %v781_v26  ;;  %768 = vmatprep.subr.bf16.mxu0 %v767_v27  ;;  %v771_v40 = vpack.c.bf16 %v60_v37, %v55_v36  ;;  %v59_v41 = vld [vmem:[%s1319_s2 + $0x118] sm:$0xff]  ;;  %v57_v42 = vld [vmem:[%s1319_s2 + $0x108] sm:$0xff]  ;;  %v62_v43 = vld [vmem:[%s1319_s2 + $0x130] sm:$0xff] }
   0xb   :  { %784 = vmatprep.subr.bf16.mxu1 %v783_v35  ;;  %v787_v44 = vpack.c.bf16 %v62_v43, %v57_v42  ;;  %v56_v45 = vld [vmem:[%s1319_s2 + $0x100] sm:$0xff]  ;;  %v61_v46 = vld [vmem:[%s1319_s2 + $0x128] sm:$0xff]  ;;  %v773_v47 = vpack.c.bf16 %v59_v41, %v54_v38  ;;  %v335_v58 = vld [vmem:[%s1320_s4 + $0x90] sm:$0xff] }
   0xc   :  { %v789_v48 = vpack.c.bf16 %v61_v46, %v56_v45  ;;  %v28_v49 = vld [vmem:[%s1319_s2 + $0x20] sm:$0xff]  ;;  %v33_v50 = vld [vmem:[%s1319_s2 + $0x48] sm:$0xff]  ;;  %v336_v59 = vld [vmem:[%s1320_s4 + $0x98] sm:$0xff] }
   0xd   :  { %770 = vmatpush1.bf16.msra.mxu0 %v769_v34  ;;  %v333_v51 = vld [vmem:[%s1320_s4 + $0x80] sm:$0xff]  ;;  %v334_v52 = vld [vmem:[%s1320_s4 + $0x88] sm:$0xff]  ;;  %v792_v57 = vpack.c.bf16 %v33_v50, %v28_v49  ;;  %v38_v61 = vld [vmem:[%s1319_s2 + $0x70] sm:$0xff]  ;;  %v807_v0 = vpack.c.bf16 %v336_v59, %v335_v58 }
   0xe   :  { %786 = vmatpush1.bf16.msra.mxu1 %v785_v39  ;;  %772 = vmatprep.subr.bf16.mxu0 %v771_v40  ;;  %v803_v53 = vpack.c.bf16 %v334_v52, %v333_v51  ;;  %v317_v54 = vld [vmem:[%s1320_s4] sm:$0xff]  ;;  %v318_v55 = vld [vmem:[%s1320_s4 + $0x8] sm:$0xff]  ;;  %v43_v62 = vld [vmem:[%s1319_s2 + $0x98] sm:$0xff] }
   0xf   :  { %788 = vmatprep.subr.bf16.mxu1 %v787_v44  ;;  %v1042_v56 = vld [vmem:[%s1321_s0] sm:$0xff]  ;;  %v805_v63 = vpack.c.bf16 %v318_v55, %v317_v54  ;;  %v319_v1 = vld [vmem:[%s1320_s4 + $0x10] sm:$0xff]  ;;  %v320_v2 = vld [vmem:[%s1320_s4 + $0x18] sm:$0xff]  ;;  %v795_v4 = vpack.c.bf16 %v43_v62, %v38_v61 }
  0x10   :  { %v337_v5 = vld [vmem:[%s1320_s4 + $0xa0] sm:$0xff]  ;;  %v338_v6 = vld [vmem:[%s1320_s4 + $0xa8] sm:$0xff]  ;;  %v809_v9 = vpack.c.bf16 %v320_v2, %v319_v1  ;;  %v339_v14 = vld [vmem:[%s1320_s4 + $0xb0] sm:$0xff] }
  0x11   :  { %774 = vmatpush1.bf16.msra.mxu0 %v773_v47  ;;  %v48_v7 = vld [vmem:[%s1319_s2 + $0xc0] sm:$0xff]  ;;  %v53_v8 = vld [vmem:[%s1319_s2 + $0xe8] sm:$0xff]  ;;  %v811_v10 = vpack.c.bf16 %v338_v6, %v337_v5  ;;  %v340_v15 = vld [vmem:[%s1320_s4 + $0xb8] sm:$0xff] }
  0x12   :  { %790 = vmatpush1.bf16.msra.mxu1 %v789_v48  ;;  %791 = vmatprep.subr.bf16.mxu0 %v886_v60  ;;  %v321_v11 = vld [vmem:[%s1320_s4 + $0x20] sm:$0xff]  ;;  %v322_v12 = vld [vmem:[%s1320_s4 + $0x28] sm:$0xff]  ;;  %v798_v13 = vpack.c.bf16 %v53_v8, %v48_v7  ;;  %v58_v16 = vld [vmem:[%s1319_s2 + $0x110] sm:$0xff]  ;;  %v815_v21 = vpack.c.bf16 %v340_v15, %v339_v14 }
  0x13   :  { %804 = vmatprep.subr.bf16.mxu1 %v803_v53  ;;  %v63_v17 = vld [vmem:[%s1319_s2 + $0x138] sm:$0xff]  ;;  %v365_v18 = vld [vmem:[%s1320_s4 + $0x180] sm:$0xff]  ;;  %v366_v19 = vld [vmem:[%s1320_s4 + $0x188] sm:$0xff]  ;;  %v813_v20 = vpack.c.bf16 %v322_v12, %v321_v11 }
  0x14   :  { %619 = vmatmul.mubr.msk.f32.vlgmr.msra.gmra.mrb[0].mxu0 %vm91_vm0, %v1042_v56  ;;  %v323_v22 = vld [vmem:[%s1320_s4 + $0x30] sm:$0xff]  ;;  %v324_v23 = vld [vmem:[%s1320_s4 + $0x38] sm:$0xff]  ;;  %v801_v24 = vpack.c.bf16 %v63_v17, %v58_v16  ;;  %v341_v25 = vld [vmem:[%s1320_s4 + $0xc0] sm:$0xff]  ;;  %v835_v27 = vpack.c.bf16 %v366_v19, %v365_v18 }
  0x15   :  { %620 = vmatmul.mubr.msk.f32.vlgmr.msra.gmra.mrb[0].mxu1 %vm91_vm0, %v1042_v56  ;;  %793 = vmatpush3.bf16.msra.mxu0 %v792_v57  ;;  %v342_v26 = vld [vmem:[%s1320_s4 + $0xc8] sm:$0xff]  ;;  %v349_v28 = vld [vmem:[%s1320_s4 + $0x100] sm:$0xff]  ;;  %v367_v30 = vld [vmem:[%s1320_s4 + $0x190] sm:$0xff]  ;;  %v817_v32 = vpack.c.bf16 %v324_v23, %v323_v22 }
  0x16   :  { %794 = vmatprep.subr.bf16.mxu0 %v886_v60  ;;  %731 = vmatprep.mubr.msk.f32.mxu0 %vm887_vm1, %v885_v3  ;;  %v350_v29 = vld [vmem:[%s1320_s4 + $0x108] sm:$0xff]  ;;  %v368_v31 = vld [vmem:[%s1320_s4 + $0x198] sm:$0xff]  ;;  %v819_v33 = vpack.c.bf16 %v342_v26, %v341_v25  ;;  %v325_v34 = vld [vmem:[%s1320_s4 + $0x40] sm:$0xff] }
  0x17   :  { %806 = vmatpush3.bf16.msra.mxu1 %v805_v63  ;;  %v326_v35 = vld [vmem:[%s1320_s4 + $0x48] sm:$0xff]  ;;  %v837_v36 = vpack.c.bf16 %v350_v29, %v349_v28  ;;  %v343_v37 = vld [vmem:[%s1320_s4 + $0xd0] sm:$0xff]  ;;  %v344_v38 = vld [vmem:[%s1320_s4 + $0xd8] sm:$0xff]  ;;  %v839_v39 = vpack.c.bf16 %v368_v31, %v367_v30 }
  0x18   :  { %808 = vmatprep.subr.bf16.mxu1 %v807_v0  ;;  %v351_v40 = vld [vmem:[%s1320_s4 + $0x110] sm:$0xff]  ;;  %v352_v41 = vld [vmem:[%s1320_s4 + $0x118] sm:$0xff]  ;;  %v369_v42 = vld [vmem:[%s1320_s4 + $0x1a0] sm:$0xff]  ;;  %v821_v44 = vpack.c.bf16 %v326_v35, %v325_v34  ;;  %v823_v45 = vpack.c.bf16 %v344_v38, %v343_v37  ;;  %v66_v34 = vlaneseq }
  0x19   :  { %796 = vmatpush3.bf16.msra.mxu0 %v795_v4  ;;  %v370_v43 = vld [vmem:[%s1320_s4 + $0x1a8] sm:$0xff]  ;;  %v327_v46 = vld [vmem:[%s1320_s4 + $0x50] sm:$0xff]  ;;  %v328_v47 = vld [vmem:[%s1320_s4 + $0x58] sm:$0xff]  ;;  %v841_v48 = vpack.c.bf16 %v352_v41, %v351_v40 }
  0x1a   :  { %797 = vmatprep.subr.bf16.mxu0 %v886_v60  ;;  %v345_v49 = vld [vmem:[%s1320_s4 + $0xe0] sm:$0xff]  ;;  %v346_v50 = vld [vmem:[%s1320_s4 + $0xe8] sm:$0xff]  ;;  %v843_v51 = vpack.c.bf16 %v370_v43, %v369_v42  ;;  %v371_v54 = vld [vmem:[%s1320_s4 + $0x1b0] sm:$0xff]  ;;  %v67_v35 = vshrl.u32 %v66_v34, 7 }
  0x1b   :  { %810 = vmatpush3.bf16.msra.mxu1 %v809_v9  ;;  %v353_v52 = vld [vmem:[%s1320_s4 + $0x120] sm:$0xff]  ;;  %v354_v53 = vld [vmem:[%s1320_s4 + $0x128] sm:$0xff]  ;;  %v372_v55 = vld [vmem:[%s1320_s4 + $0x1b8] sm:$0xff]  ;;  %v827_v57 = vpack.c.bf16 %v346_v50, %v345_v49 }
  0x1c   :  { %812 = vmatprep.subr.bf16.mxu1 %v811_v10  ;;  %v329_v58 = vld [vmem:[%s1320_s4 + $0x60] sm:$0xff]  ;;  %v330_v59 = vld [vmem:[%s1320_s4 + $0x68] sm:$0xff]  ;;  %v845_v61 = vpack.c.bf16 %v354_v53, %v353_v52  ;;  %v847_v62 = vpack.c.bf16 %v372_v55, %v371_v54  ;;  %v355_v63 = vld [vmem:[%s1320_s4 + $0x130] sm:$0xff]  ;;  %v72_v38 = vsub.s32 1, %v67_v35  ;;  %v80_v40 = vsub.s32 3, %v67_v35 }
  0x1d   :  { %799 = vmatpush3.bf16.msra.mxu0 %v798_v13  ;;  %v356_v0 = vld [vmem:[%s1320_s4 + $0x138] sm:$0xff]  ;;  %v373_v1 = vld [vmem:[%s1320_s4 + $0x1c0] sm:$0xff]  ;;  %v374_v2 = vld [vmem:[%s1320_s4 + $0x1c8] sm:$0xff]  ;;  %v829_v4 = vpack.c.bf16 %v330_v59, %v329_v58 }
  0x1e   :  { %800 = vmatprep.subr.bf16.mxu0 %v886_v60  ;;  %v849_v5 = vpack.c.bf16 %v356_v0, %v355_v63  ;;  %v851_v6 = vpack.c.bf16 %v374_v2, %v373_v1  ;;  %v357_v7 = vld [vmem:[%s1320_s4 + $0x140] sm:$0xff]  ;;  %v358_v8 = vld [vmem:[%s1320_s4 + $0x148] sm:$0xff]  ;;  %v375_v9 = vld [vmem:[%s1320_s4 + $0x1d0] sm:$0xff] }
  0x1f   :  { %814 = vmatpush3.bf16.msra.mxu1 %v813_v20  ;;  %v376_v10 = vld [vmem:[%s1320_s4 + $0x1d8] sm:$0xff]  ;;  %v853_v11 = vpack.c.bf16 %v358_v8, %v357_v7  ;;  %v359_v13 = vld [vmem:[%s1320_s4 + $0x150] sm:$0xff]  ;;  %v377_v16 = vld [vmem:[%s1320_s4 + $0x1e0] sm:$0xff] }
  0x20   :  { %816 = vmatprep.subr.bf16.mxu1 %v815_v21  ;;  %v855_v12 = vpack.c.bf16 %v376_v10, %v375_v9  ;;  %v360_v14 = vld [vmem:[%s1320_s4 + $0x158] sm:$0xff]  ;;  %v378_v17 = vld [vmem:[%s1320_s4 + $0x1e8] sm:$0xff]  ;;  %v347_v19 = vld [vmem:[%s1320_s4 + $0xf0] sm:$0xff]  ;;  %v84_v10 = vsub.s32 4, %v67_v35 }
  0x21   :  { %802 = vmatpush3.bf16.msra.mxu0 %v801_v24  ;;  %v857_v15 = vpack.c.bf16 %v360_v14, %v359_v13  ;;  %v859_v18 = vpack.c.bf16 %v378_v17, %v377_v16  ;;  %v348_v20 = vld [vmem:[%s1320_s4 + $0xf8] sm:$0xff]  ;;  %v361_v21 = vld [vmem:[%s1320_s4 + $0x160] sm:$0xff]  ;;  %v362_v23 = vld [vmem:[%s1320_s4 + $0x168] sm:$0xff] }
  0x22   :  { %836 = vmatprep.subr.bf16.mxu0 %v835_v27  ;;  %v831_v22 = vpack.c.bf16 %v348_v20, %v347_v19  ;;  %v331_v24 = vld [vmem:[%s1320_s4 + $0x70] sm:$0xff]  ;;  %v332_v25 = vld [vmem:[%s1320_s4 + $0x78] sm:$0xff]  ;;  %v861_v26 = vpack.c.bf16 %v362_v23, %v361_v21  ;;  %v64_v37 = vld [vmem:[%s1322_s3] sm:$0x1f] }
  0x23   :  { %818 = vmatpush3.bf16.msra.mxu1 %v817_v32  ;;  %v833_v27 = vpack.c.bf16 %v332_v25, %v331_v24  ;;  %v379_v28 = vld [vmem:[%s1320_s4 + $0x1f0] sm:$0xff]  ;;  %v380_v29 = vld [vmem:[%s1320_s4 + $0x1f8] sm:$0xff]  ;;  %v73_v42 = vrot.slane %v64_v37, %v72_v38  ;;  %v382_v52 = vld [vmem:[%s1320_s4 + $0x208] sm:$0xff]  ;;  %v85_v13 = vrot.slane %v64_v37, %v84_v10 }
  0x24   :  { %732 = vmatmul.mubr.msk.f32.vlgmr.msra.gmra.mrb[2].mxu0 %vm91_vm0, %v1042_v56  ;;  %820 = vmatprep.subr.bf16.mxu1 %v819_v33  ;;  %v825_v56 = vpack.c.bf16 %v328_v47, %v327_v46  ;;  %v863_v30 = vpack.c.bf16 %v380_v29, %v379_v28  ;;  %v363_v31 = vld [vmem:[%s1320_s4 + $0x170] sm:$0xff]  ;;  %v364_v32 = vld [vmem:[%s1320_s4 + $0x178] sm:$0xff]  ;;  %v308_v46 = vld [vmem:[%s1323_s1 + $0x8] sm:$0xff] }
  0x25   :  { %838 = vmatpush3.bf16.msra.mxu0 %v837_v36  ;;  %v865_v33 = vpack.c.bf16 %v364_v32, %v363_v31  ;;  %v68_v36 = vsub.s32 0, %v67_v35  ;;  %v309_v50 = vld [vmem:[%s1323_s1 + $0x10] sm:$0xff]  ;;  %v307_v53 = vld [vmem:[%s1323_s1] sm:$0xff]  ;;  %v384_v2 = vld [vmem:[%s1320_s4 + $0x218] sm:$0xff] }
  0x26   :  { %840 = vmatprep.subr.bf16.mxu0 %v839_v39  ;;  %v76_v39 = vsub.s32 2, %v67_v35  ;;  %v383_v1 = vld [vmem:[%s1320_s4 + $0x210] sm:$0xff]  ;;  %v388_v9 = vld [vmem:[%s1320_s4 + $0x238] sm:$0xff]  ;;  %v390_v16 = vld [vmem:[%s1320_s4 + $0x248] sm:$0xff] }
  0x27   :  { %822 = vmatpush3.bf16.msra.mxu1 %v821_v44  ;;  %v69_v41 = vrot.slane %v64_v37, %v68_v36  ;;  %v81_v44 = vrot.slane %v64_v37, %v80_v40  ;;  %v387_v8 = vld [vmem:[%s1320_s4 + $0x230] sm:$0xff]  ;;  %v311_v19 = vld [vmem:[%s1323_s1 + $0x20] sm:$0xff] }
  0x28   :  { %824 = vmatprep.subr.bf16.mxu1 %v823_v45  ;;  %v77_v43 = vrot.slane %v64_v37, %v76_v39  ;;  %v391_v21 = vld [vmem:[%s1320_s4 + $0x250] sm:$0xff] }
  0x29   :  { %842 = vmatpush3.bf16.msra.mxu0 %v841_v48 }
  0x2a   :  { %844 = vmatprep.subr.bf16.mxu0 %v843_v51  ;;  %v381_v51 = vld [vmem:[%s1320_s4 + $0x200] sm:$0xff] }
  0x2b   :  { %826 = vmatpush3.bf16.msra.mxu1 %v825_v56 }
  0x2c   :  { %828 = vmatprep.subr.bf16.mxu1 %v827_v57  ;;  %v310_v57 = vld [vmem:[%s1323_s1 + $0x18] sm:$0xff] }
  0x2d   :  { %846 = vmatpush3.bf16.msra.mxu0 %v845_v61 }
  0x2e   :  { %848 = vmatprep.subr.bf16.mxu0 %v847_v62  ;;  %v868_v62 = vpack.c.bf16 %v382_v52, %v381_v51 }
  0x2f   :  { %830 = vmatpush3.bf16.msra.mxu1 %v829_v4  ;;  %v871_v4 = vpack.c.bf16 %v384_v2, %v383_v1 }
  0x30   :  { %832 = vmatprep.subr.bf16.mxu1 %v831_v22 }
  0x31   :  { %850 = vmatpush3.bf16.msra.mxu0 %v849_v5  ;;  %v385_v5 = vld [vmem:[%s1320_s4 + $0x220] sm:$0xff] }
  0x32   :  { %852 = vmatprep.subr.bf16.mxu0 %v851_v6  ;;  %v386_v6 = vld [vmem:[%s1320_s4 + $0x228] sm:$0xff] }
  0x33   :  { %834 = vmatpush3.bf16.msra.mxu1 %v833_v27  ;;  %v874_v7 = vpack.c.bf16 %v386_v6, %v385_v5 }
  0x34   :  { %867 = vmatprep.subr.bf16.mxu1 %v886_v60 }
  0x35   :  { %854 = vmatpush3.bf16.msra.mxu0 %v853_v11  ;;  %v877_v11 = vpack.c.bf16 %v388_v9, %v387_v8 }
  0x36   :  { %856 = vmatprep.subr.bf16.mxu0 %v855_v12 }
  0x39   :  { %858 = vmatpush3.bf16.msra.mxu0 %v857_v15  ;;  %v389_v15 = vld [vmem:[%s1320_s4 + $0x240] sm:$0xff] }
  0x3a   :  { %860 = vmatprep.subr.bf16.mxu0 %v859_v18  ;;  %v880_v17 = vpack.c.bf16 %v390_v16, %v389_v15 }
  0x3d   :  { %862 = vmatpush3.bf16.msra.mxu0 %v861_v26 }
  0x3e   :  { %864 = vmatprep.subr.bf16.mxu0 %v863_v30 }
  0x41   :  { %866 = vmatpush3.bf16.msra.mxu0 %v865_v33 }
  0xe7   :  { %v161_v45 = vpop.f32.mrb[0].mxu0 }
  0xe8   :  { %v162_v47 = vadd.f32 %v161_v45, %v69_v41  ;;  %v163_v48 = vpop.f32.mrb[1].mxu0  ;;  %v232_v49 = vpop.f32.mrb[0].mxu1 }
  0xe9   :  { %v164_v54 = vadd.f32 %v163_v48, %v73_v42  ;;  %v233_v55 = vadd.f32 %v232_v49, %v77_v43  ;;  %v234_v56 = vpop.f32.mrb[1].mxu1 }
  0xea   :  { %v235_v58 = vadd.f32 %v234_v56, %v81_v44  ;;  %v312_v63 = vadd.f32 %v307_v53, %v162_v47 }
  0xeb   :  { %v313_v59 = vadd.f32 %v308_v46, %v164_v54  ;;  %v314_v61 = vadd.f32 %v309_v50, %v233_v55 }
  0xec   :  { %v315_v0 = vadd.f32 %v310_v57, %v235_v58 }
  0xed   :  { %467 = vmatprep.mubr.f32.mxu1 %v313_v59 }
  0xee   :  { %468 = vmatmul.mubr.f32.vlgmr.msra.gmra.mrb[2].mxu1 %v312_v63  ;;  %537 = vmatprep.mubr.f32.mxu0 %v315_v0 }
  0xef   :  { %869 = vmatpush3.bf16.msra.mxu1 %v868_v62  ;;  %538 = vmatmul.mubr.f32.vlgmr.msra.gmra.mrb[4].mxu0 %v314_v61 }
  0xf0   :  { %870 = vmatprep.subr.bf16.mxu1 %v886_v60  ;;  %756 = vmatprep.mubr.msk.f32.mxu1 %vm887_vm1, %v885_v3 }
  0xf3   :  { %872 = vmatpush3.bf16.msra.mxu1 %v871_v4 }
  0xf4   :  { %873 = vmatprep.subr.bf16.mxu1 %v886_v60 }
  0xf7   :  { %875 = vmatpush3.bf16.msra.mxu1 %v874_v7  ;;  %v303_v12 = vpop.f32.mrb[2].mxu0 }
  0xf8   :  { %876 = vmatprep.subr.bf16.mxu1 %v886_v60  ;;  %v733_v14 = vpop.f32.mrb[3].mxu0  ;;  %v304_v18 = vadd.f32 %v303_v12, %v85_v13 }
  0xfa   :  { %v316_v20 = vadd.f32 %v311_v19, %v304_v18 }
  0xfb   :  { %878 = vmatpush3.bf16.msra.mxu1 %v877_v11 }
  0xfc   :  { %879 = vmatprep.subr.bf16.mxu1 %v886_v60  ;;  %v622_v60 = vld [vmem:[%s1324_s5] ss:$0 sm:$0xff] }
  0xff   :  { %881 = vmatpush3.bf16.msra.mxu1 %v880_v17 }
 0x100   :  { %754 = vmatprep.subr.mxu1 %v885_v3 }
 0x103   :  { %755 = vmatpush3.msra.mxu1 %v391_v21 }
 0x104   :  { %757 = vmatmul.mubr.msk.f32.vlgmr.msra.gmra.mrb[4].mxu1 %vm399_vm2, %v316_v20 }
 0x1c1   :  { %v665_v22 = vpop.f32.mrb[2].mxu1 }
 0x1c2   :  { %v666_v23 = vpop.f32.mrb[3].mxu1  ;;  %v700_v24 = vpop.f32.mrb[4].mxu0 }
 0x1c3   :  { %v667_v25 = vadd.f32 %v666_v23, %v665_v22  ;;  %v701_v26 = vpop.f32.mrb[5].mxu0 }
 0x1c4   :  { %v702_v27 = vadd.f32 %v701_v26, %v700_v24 }
 0x1c5   :  { %v470_v28 = vadd.f32 %v667_v25, %v622_v60 }
 0x1c7   :  { %v540_v29 = vadd.f32 %v702_v27, %v470_v28 }
 0x1d7   :  { %v609_v3 = vpop.f32.mrb[4].mxu1 }
 0x1d8   :  { %v610_v30 = vadd.f32 %v609_v3, %v540_v29  ;;  %v758_v31 = vpop.f32.mrb[5].mxu1 }
 0x1da   :  { %614 = vst.msk [vmem:[%s1325_s6] sm:$0xff] %vm613_vm3, %v610_v30 }

</bundles_post_ra>
